<compile_context>
chip_gen: v5e
topology: v5e:2x2
jax: 0.10.0
libtpu: 0.0.40
codegen_flags: <defaults>
</compile_context>

<pallas_src>
import jax
import jax.numpy as jnp
from jax import lax
from jax.experimental import pallas as pl
from jax.experimental.pallas import tpu as pltpu


def _round_up(x, m):
    return ((x + m - 1) // m) * m


def _sim_kernel(q_ref, r_ref, o_ref):
    # q_ref: (tm, d_pad) bf16, already L2-normalized.
    # r_ref: (d_pad, tn) bf16, already L2-normalized and pre-transposed.
    # Canonical (M,K)x(K,N) MXU matmul with f32 accumulation; the only
    # per-element post-work left in-kernel is the clamp.
    sim = jnp.dot(q_ref[...], r_ref[...], preferred_element_type=jnp.float32)
    o_ref[...] = jnp.clip(sim, 0.0, 1.0).astype(o_ref.dtype)


def pairwise_similarity(query, reference, *, tm=512, tn=2048, out_dtype=jnp.float32):
    """Pallas equivalent of Similarity(metric='cosine').forward.

    query:     (N_query, D)
    reference: (N_objects, N_templates, D)
    returns:   (N_query, N_objects, N_templates) in [0, 1]
    """
    n_query, d = query.shape
    n_objects, n_templates, d_r = reference.shape
    assert d == d_r
    m_ref = n_objects * n_templates

    qf = query.astype(jnp.float32)
    rf = reference.reshape(m_ref, d).astype(jnp.float32)

    # F.normalize(eps=1e-12): x / max(||x||, 1e-12) == x * rsqrt(max(||x||^2, 1e-24)).
    q_inv = lax.rsqrt(jnp.maximum(jnp.sum(qf * qf, axis=-1, keepdims=True), 1e-24))
    r_inv = lax.rsqrt(jnp.maximum(jnp.sum(rf * rf, axis=-1, keepdims=True), 1e-24))
    qn = qf * q_inv
    rn = rf * r_inv

    d_pad = _round_up(d, 128)                      # MXU K granule / lane-aligned K
    out_bytes = jnp.dtype(out_dtype).itemsize

    # ---- tile selection -----------------------------------------------------
    # Lane (N) tile: multiple of 128, never larger than the (128-rounded)
    # output width, so output blocks never exceed the array; only the final
    # block is a masked partial store. Tiny outputs (<128 cols) pad to one tile.
    m_out = m_ref if m_ref >= 128 else 128
    tn = max(128, min(_round_up(tn, 128), (m_out // 128) * 128))
    # Sublane (M) tile: multiple of 16 (bf16 sublane packing); tiny query
    # batches use the full (always-legal) first dim.
    if n_query >= 16:
        tm = max(16, min(_round_up(tm, 16), (n_query // 16) * 16))
    else:
        tm = n_query

    # Generation-aware VMEM budget (v7x: 64 MiB/TC; v5e/v6e: 128 MiB).
    try:
        vmem_cap = int(pltpu.get_tpu_info().vmem_capacity_bytes)
    except Exception:
        vmem_cap = 64 * 1024 * 1024                # conservative (v7x) fallback
    budget = int(vmem_cap * 0.6)

    def footprint(tm_, tn_):
        # double-buffered: bf16 q tile + bf16 r tile + output tile.
        return 2 * (tm_ * d_pad * 2 + d_pad * tn_ * 2 + tm_ * tn_ * out_bytes)

    while footprint(tm, tn) > budget:
        if tn > 512:
            tn = max(512, ((tn // 2) // 128) * 128)
        elif tm > 16:
            tm = max(16, ((tm // 2) // 16) * 16)
        else:
            break
    # TODO(synk): for very large D (>= ~4-8K) add a K grid axis ("arbitrary")
    # with an f32 VMEM accumulator instead of loading the full d_pad per block.

    grid_i = pl.cdiv(n_query, tm)                  # query-row blocks
    grid_j = pl.cdiv(m_out, tn)                    # reference-column blocks
    n_q_pad = grid_i * tm                          # full query input blocks
    m_pad = grid_j * tn                            # full reference input blocks

    # Normalize + pad + transpose + bf16 cast all fuse into one XLA pass per
    # input in the wrapper (no in-kernel post-scale needed).
    q_p = jnp.pad(qn, ((0, n_q_pad - n_query), (0, d_pad - d))).astype(jnp.bfloat16)
    r_p = jnp.pad(rn.T, ((0, d_pad - d), (0, m_pad - m_ref))).astype(jnp.bfloat16)

    vmem_limit = int(min(max(footprint(tm, tn) + 8 * 1024 * 1024,
                             32 * 1024 * 1024),
                         vmem_cap * 3 // 4))

    out = pl.pallas_call(
        _sim_kernel,
        out_shape=jax.ShapeDtypeStruct((n_query, m_out), out_dtype),
        grid_spec=pltpu.PrefetchScalarGridSpec(
            num_scalar_prefetch=0,
            # Reference axis outermost: the (usually much larger) reference is
            # streamed exactly once; only the small query tile is re-fetched.
            grid=(grid_j, grid_i),
            in_specs=[
                pl.BlockSpec((tm, d_pad), lambda j, i: (i, 0)),   # normalized q (bf16)
                pl.BlockSpec((d_pad, tn), lambda j, i: (0, j)),   # normalized r^T (bf16)
            ],
            out_specs=pl.BlockSpec((tm, tn), lambda j, i: (i, j)),
        ),
        compiler_params=pltpu.CompilerParams(
            dimension_semantics=("parallel", "parallel"),
            vmem_limit_bytes=vmem_limit,
        ),
    )(q_p, r_p)

    if m_out != m_ref:                             # only for tiny (<128-col) outputs
        out = out[:, :m_ref]
    return out.reshape(n_query, n_objects, n_templates)


def _reference_jax(query, reference):
    # Pure-JAX (f32) reference of the PyTorch semantics, for a sanity check.
    qn = query / jnp.maximum(jnp.linalg.norm(query, axis=-1, keepdims=True), 1e-12)
    rn = reference / jnp.maximum(jnp.linalg.norm(reference, axis=-1, keepdims=True), 1e-12)
    sim = jnp.einsum("qd,otd->qot", qn, rn)
    return jnp.clip(sim, 0.0, 1.0)


if __name__ == "__main__":
    key = jax.random.PRNGKey(0)
    k1, k2, k3, k4 = jax.random.split(key, 4)

    # Case 1: small shapes (exercises D 32->128 padding and the tiny-output
    # <128-column path).
    n_query, n_objects, n_templates, d = 8, 4, 16, 32
    query = jax.random.normal(k1, (n_query, d), dtype=jnp.float32)
    reference = jax.random.normal(k2, (n_objects, n_templates, d), dtype=jnp.float32)
    out = jax.block_until_ready(pairwise_similarity(query, reference))
    ref = _reference_jax(query, reference)
    assert out.shape == (n_query, n_objects, n_templates)
    # bf16 MXU inputs -> loosened tolerance vs. the f32 reference.
    assert jnp.allclose(out, ref, atol=2e-2), float(jnp.max(jnp.abs(out - ref)))

    # Case 2: non-divisible shapes exercising the 2-D grid, full input blocks,
    # and masked partial output blocks on both axes (no output padding).
    n_query, n_objects, n_templates, d = 40, 3, 50, 96
    query = jax.random.normal(k3, (n_query, d), dtype=jnp.float32)
    reference = jax.random.normal(k4, (n_objects, n_templates, d), dtype=jnp.float32)
    out = jax.block_until_ready(pairwise_similarity(query, reference, tm=16, tn=128))
    ref = _reference_jax(query, reference)
    assert out.shape == (n_query, n_objects, n_templates)
    assert jnp.allclose(out, ref, atol=2e-2), float(jnp.max(jnp.abs(out - ref)))

    print("KERNEL_OK")
</pallas_src>

<mosaic_0001>
module attributes {stable_mosaic.version = 11 : i64} {
  func.func @_sim_kernel(%arg0: i32, %arg1: i32, %arg2: memref<8x128xbf16, #tpu.memory_space<vmem>>, %arg3: memref<128x128xbf16, #tpu.memory_space<vmem>>, %arg4: memref<8x128xf32, #tpu.memory_space<vmem>>) attributes {dimension_semantics = [#tpu.dimension_semantics<parallel>, #tpu.dimension_semantics<parallel>], iteration_bounds = array<i64: 1, 1>, scalar_prefetch = 0 : i64, scratch_operands = 0 : i64, tpu.core_type = #tpu.core_type<tc>, window_params = [{transform_indices = @transform_0, window_bounds = array<i64: 8, 128>}, {transform_indices = @transform_1, window_bounds = array<i64: 128, 128>}, {transform_indices = @transform_2, window_bounds = array<i64: 8, 128>}]} {
    %c0 = arith.constant 0 : index
    %c0_0 = arith.constant 0 : index
    %0 = vector.load %arg2[%c0, %c0_0] : memref<8x128xbf16, #tpu.memory_space<vmem>>, vector<8x128xbf16>
    %c0_1 = arith.constant 0 : index
    %c0_2 = arith.constant 0 : index
    %1 = vector.load %arg3[%c0_1, %c0_2] : memref<128x128xbf16, #tpu.memory_space<vmem>>, vector<128x128xbf16>
    %cst = arith.constant dense<0.000000e+00> : vector<8x128xf32>
    %2 = tpu.matmul %0, %1, %cst {dimension_numbers = #tpu.dot_dimension_numbers<[1], [0], [0], [1], [0, 0, 1, 1], [], []>} : vector<8x128xbf16>, vector<128x128xbf16>, vector<8x128xf32> -> vector<8x128xf32>
    %cst_3 = arith.constant 0.000000e+00 : f32
    %cst_4 = arith.constant 1.000000e+00 : f32
    %3 = vector.broadcast %cst_3 : f32 to vector<8x128xf32>
    %4 = arith.maximumf %3, %2 : vector<8x128xf32>
    %5 = vector.broadcast %cst_4 : f32 to vector<8x128xf32>
    %6 = arith.minimumf %5, %4 : vector<8x128xf32>
    %c0_5 = arith.constant 0 : index
    %c0_6 = arith.constant 0 : index
    %7 = vector.load %arg4[%c0_5, %c0_6] : memref<8x128xf32, #tpu.memory_space<vmem>>, vector<8x128xf32>
    tpu.vector_store %arg4[%c0_5, %c0_6], %6 {strides = array<i32>} : memref<8x128xf32, #tpu.memory_space<vmem>>, vector<8x128xf32>,
    return
  }
  func.func @transform_0(%arg0: i32, %arg1: i32) -> (i32, i32) {
    %c0_i32 = arith.constant 0 : i32
    %c0_i32_0 = arith.constant 0 : i32
    return %arg1, %c0_i32 : i32, i32
  }
  func.func @transform_1(%arg0: i32, %arg1: i32) -> (i32, i32) {
    %c0_i32 = arith.constant 0 : i32
    %c0_i32_0 = arith.constant 0 : i32
    return %c0_i32, %arg0 : i32, i32
  }
  func.func @transform_2(%arg0: i32, %arg1: i32) -> (i32, i32) {
    %c0_i32 = arith.constant 0 : i32
    return %arg1, %arg0 : i32, i32
  }
}

</mosaic_0001>

<bundles_post_ra>
// kernel: tpu_custom_call.1
= control target key start
LH: loop header
LB: loop body
LE: loop exit
PB: predicated region body
PF: predicated region fallthrough
CT: control target
= control target key end

     0   :  { %7 = vsyncpa [#allocation3], 0  ;;  %s293_s0 = inlined_call_operand.hbm [shape: bf16[8,128], index: 0, kind: input, shape index: {}]   ;;  %s294_s1 = inlined_call_operand.hbm [shape: bf16[128,128], index: 1, kind: input, shape index: {}]   ;;  %s295_s2 = inlined_call_operand.hbm [shape: f32[8,128], index: 2, kind: output, shape index: {}]  }
   0x1   :  { %8 = vsyncpa [#allocation6], 0 }
   0x2   :  { %9 = vsyncpa [#allocation4], 0  ;;  %s15_s11 = sshll.u32 %s293_s0, 4  ;;  %s264_s12 = smov [#allocation2]   ;;  %s16_s11 = int_to_ptr.hbm [resolvable:$true] %s15_s11 }
   0x3   :  { %s17_s13 = sshll.u32 %s264_s12, 4  ;;  %s25_s16 = sshll.u32 %s294_s1, 4  ;;  %s18_s13 = int_to_ptr.vmem [resolvable:$true] %s17_s13  ;;  %s26_s16 = int_to_ptr.hbm [resolvable:$true] %s25_s16 }
   0x4   :  { %20 = dma.hbm_to_vmem [thread:$0]  %s16_s11, 64, %s18_s13, [#allocation3]  }
   0x5   :  { %s265_s17 = smov [#allocation5]   ;;  %s266_s19 = smov 64  }
   0x6   :  { %s27_s18 = sshll.u32 %s265_s17, 4  ;;  %s267_s20 = smov 4   ;;  %s28_s18 = int_to_ptr.vmem [resolvable:$true] %s27_s18 }
   0x7   :  { %33 = dma.hbm_to_vmem [thread:$0]  %s26_s16, 1024, %s28_s18, [#allocation6], %s266_s19, %s266_s19, %s267_s20  }
   0x8   :  { %258 = dma.done.wait [#allocation3], 64  }
   0x9   :  { %259 = vsyncadd [#allocation3], 4294967232 }
   0xa   :  { %260 = dma.done.wait [#allocation6], 1024  }
   0xb   :  { %261 = vsyncadd [#allocation6], 4294966272  ;;  %v180_v0 = vld [vmem:[#allocation5 + $0x38] sm:$0xff]  ;;  %v179_v1 = vld [vmem:[#allocation5 + $0x30] sm:$0xff]  ;;  %s268_s0 = smov [#allocation7]   ;;  %s130_s23 = sshll.u32 %s295_s2, 4  ;;  %s131_s23 = int_to_ptr.hbm [resolvable:$true] %s130_s23 }
   0xc   :  { %107 = vmatpush.bf16.msra.mxu0 %v180_v0  ;;  %v178_v2 = vld [vmem:[#allocation5 + $0x28] sm:$0xff]  ;;  %v177_v3 = vld [vmem:[#allocation5 + $0x20] sm:$0xff]  ;;  %v176_v4 = vld [vmem:[#allocation5 + $0x18] sm:$0xff]  ;;  %s128_s1 = sshll.u32 %s268_s0, 4  ;;  %s129_s1 = int_to_ptr.vmem [resolvable:$true] %s128_s1 }
   0xd   :  { %v175_v5 = vld [vmem:[#allocation5 + $0x10] sm:$0xff]  ;;  %v174_v6 = vld [vmem:[#allocation5 + $0x8] sm:$0xff]  ;;  %v173_v7 = vld [vmem:[#allocation5] sm:$0xff] }
   0xe   :  { %v42_v8 = vld [vmem:[#allocation2] sm:$0xf] }
  0x10   :  { %108 = vmatpush.bf16.msra.mxu0 %v179_v1 }
  0x14   :  { %109 = vmatpush.bf16.msra.mxu0 %v178_v2 }
  0x18   :  { %110 = vmatpush.bf16.msra.mxu0 %v177_v3 }
  0x1c   :  { %111 = vmatpush.bf16.msra.mxu0 %v176_v4 }
  0x20   :  { %112 = vmatpush.bf16.msra.mxu0 %v175_v5 }
  0x24   :  { %113 = vmatpush.bf16.msra.mxu0 %v174_v6 }
  0x28   :  { %114 = vmatpush.bf16.msra.mxu0 %v173_v7 }
  0x2b   :  { %115 = vmatmul.bf16.vlgmr.msra.gmra.mxu0 %v42_v8 }
  0xa8   :  { %v116_v9 = vpop.f32.mrf.mxu0 }
  0xa9   :  { %v120_v10 = vmax.f32 %v116_v9, 0.0 }
  0xab   :  { %v121_v11 = vmin.f32 %v120_v10, 1.0 }
  0xad   :  { %122 = vst [vmem:[#allocation7] sm:$0xff] %v121_v11 }
  0xae   :  { %133 = dma.vmem_to_hbm [thread:$0]  %s129_s1, 128, %s131_s23, [#allocation4]  }
  0xb0   :  { %v118_v12 = vpop.f32.mrf.mxu0 }
  0xb1   :  { %262 = dma.done.wait [#allocation4], 128  }
  0xb2   :  { %263 = vsyncadd [#allocation4], 4294967168 }
  0xb3   :  { %138 = vsyncpa [#allocation3], 1 }
  0xb4   :  { %139 = vsyncpa [#allocation6], 1 }
  0xb5   :  { %140 = vsyncpa [#allocation4], 1 }

</bundles_post_ra>
